<compile_context>
chip_gen: v5e
topology: v5e:2x2
jax: 0.10.0
libtpu: 0.0.40
codegen_flags: <defaults>
</compile_context>

<pallas_src>
import jax
import jax.numpy as jnp
from jax.experimental import pallas as pl
from jax.experimental.pallas import tpu as pltpu

# ---- model dims (small, consistent with the module's forward) ----
B, C_IN, H, W = 2, 4, 16, 16
C_MID = 8            # synthetic unet hidden channels
HW = H * W           # 256 (lane-dense)
F_EXT = 128          # extractor output features (lane-aligned)
K_OFFS = [(ky - 1) * W + (kx - 1) for ky in range(3) for kx in range(3)]


def _valid_masks():
    """(9, HW) f32: per-tap spatial validity (zeroes the roll wrap-around lanes)."""
    p = jnp.arange(HW, dtype=jnp.int32)
    px, py = p % W, p // W
    rows = []
    for ky in range(3):
        for kx in range(3):
            oy, ox = py + (ky - 1), px + (kx - 1)
            ok = (oy >= 0) & (oy < H) & (ox >= 0) & (ox < W)
            rows.append(ok.astype(jnp.float32))
    return jnp.stack(rows, axis=0)


# -------------------- fused Pallas kernel --------------------

def encoder_fused_kernel(x_ref, valid_ref, w1_ref, b1_ref, w2_ref, b2_ref,
                         wext_ref, bext_ref, v_ref, mask_ref):
    # x_ref    : (B*C_IN, HW)              rows ordered (b, ci)
    # valid_ref: (9, HW)                   per-tap spatial validity masks
    # w1_ref   : (B*C_MID, 9*B*C_IN)       taps folded into K (lane-dense)
    # b1_ref   : (B*C_MID, 1)
    # w2_ref   : (B, 9*B*C_MID)
    # b2_ref   : (B, 1)
    # wext_ref : (HW, F_EXT), bext_ref: (1, F_EXT)
    # v_ref    : (B*C_IN, F_EXT)           lane-dense output
    # mask_ref : (B, HW)

    x = x_ref[...]

    def shifted_slab(a):
        # Build the (9*rows, HW) slab: tap k is roll(a, -d_k) with wrap-around zeroed.
        taps = []
        for k, d in enumerate(K_OFFS):
            if d == 0:
                taps.append(a)                      # center tap: no shift, all-valid
            else:
                rolled = pltpu.roll(a, shift=(-d) % HW, axis=1)
                taps.append(rolled * valid_ref[k:k + 1, :])
        return jnp.concatenate(taps, axis=0)

    # ---- conv1: 3x3, C_IN -> C_MID, + ReLU (one matmul, K = 9*B*C_IN) ----
    slab1 = shifted_slab(x)                                           # (9*B*C_IN, HW)
    h1 = jnp.dot(w1_ref[...], slab1, preferred_element_type=jnp.float32)
    h1 = jnp.maximum(h1 + b1_ref[...], 0.0)                           # (B*C_MID, HW)

    # ---- conv2: 3x3, C_MID -> 1, + sigmoid -> mask (one matmul, K = 9*B*C_MID) ----
    slab2 = shifted_slab(h1)                                          # (9*B*C_MID, HW)
    m = jnp.dot(w2_ref[...], slab2, preferred_element_type=jnp.float32)
    m = jax.nn.sigmoid(m + b2_ref[...])                               # (B, HW)
    mask_ref[...] = m

    # ---- extractor: one M = B*C_IN matmul on the masked channels ----
    # row b*C_IN + i uses the mask of batch b (plain sublane broadcast, no where/select)
    mask_rows = jnp.concatenate(
        [jnp.broadcast_to(m[b:b + 1, :], (C_IN, HW)) for b in range(B)], axis=0)
    d0 = x * mask_rows                                                # (B*C_IN, HW)
    v = jnp.dot(d0, wext_ref[...], preferred_element_type=jnp.float32) + bext_ref[...]
    v_ref[...] = jnp.maximum(v, 0.0)                                  # (B*C_IN, F_EXT)


# -------------------- parameters --------------------

def init_params(key):
    """Raw parameters (same layout as the plain-JAX reference's im2col weights)."""
    k1, k2, k3, k4 = jax.random.split(key, 4)
    w1 = jax.random.normal(k1, (9 * C_IN, C_MID), jnp.float32) * 0.1   # rows ordered (tap k, ci)
    b1 = jnp.zeros((1, C_MID), jnp.float32)
    w2 = jax.random.normal(k2, (9 * C_MID, 1), jnp.float32) * 0.1
    b2 = jnp.zeros((1, 1), jnp.float32)
    w_ext = jax.random.normal(k3, (HW, F_EXT), jnp.float32) * 0.05
    b_ext = jax.random.normal(k4, (1, F_EXT), jnp.float32) * 0.01
    # TODO(synk): self.mask = nn.Parameter(ones(100,100)) is never used in forward; omitted.
    return (w1, b1, w2, b2, w_ext, b_ext)


def pack_params(params):
    """One-time weight repack (outside the forward).

    Taps are folded into the contraction dim: column block k of the packed
    weight is kron(I_B, w_k^T), so conv = ONE matmul against the shifted slab.
    """
    w1, b1, w2, b2, w_ext, b_ext = params
    eye_b = jnp.eye(B, dtype=jnp.float32)
    w1p = jnp.concatenate(
        [jnp.kron(eye_b, w1[k * C_IN:(k + 1) * C_IN, :].T) for k in range(9)],
        axis=1)                                                # (B*C_MID, 9*B*C_IN)
    w2p = jnp.concatenate(
        [jnp.kron(eye_b, w2[k * C_MID:(k + 1) * C_MID, :].T) for k in range(9)],
        axis=1)                                                # (B, 9*B*C_MID)
    b1col = jnp.tile(b1.reshape(-1), B).reshape(B * C_MID, 1)  # (B*C_MID, 1)
    b2col = jnp.tile(b2.reshape(-1), B).reshape(B, 1)          # (B, 1)
    valid = _valid_masks()                                     # (9, HW)
    return (w1p, b1col, w2p, b2col, w_ext, b_ext, valid)


# -------------------- forward --------------------

_COST = pl.CostEstimate(
    flops=1_261_568,          # 2*(16*72 + 2*144)*256 + 2*8*256*128
    transcendentals=512,      # sigmoid on (B, HW)
    bytes_accessed=161_000,   # f32 inputs + outputs (~160 KB, dominated by w_ext)
)


@jax.jit
def encoder_forward(x_nchw, packed):
    """Returns (v, mask) matching PyTorch Encoder.forward:
       v: (B, C_IN * F_EXT), mask: (B, 1, H, W)."""
    w1p, b1col, w2p, b2col, w_ext, b_ext, valid = packed
    x_flat = x_nchw.reshape(B * C_IN, HW)       # contiguous reshape, no transpose / no copy

    vmem = pl.BlockSpec(memory_space=pltpu.MemorySpace.VMEM)
    v2d, m2d = pl.pallas_call(
        encoder_fused_kernel,
        out_shape=(jax.ShapeDtypeStruct((B * C_IN, F_EXT), jnp.float32),
                   jax.ShapeDtypeStruct((B, HW), jnp.float32)),
        in_specs=[vmem] * 8,
        out_specs=(vmem, vmem),
        cost_estimate=_COST,
    )(x_flat, valid, w1p, b1col, w2p, b2col, w_ext, b_ext)

    v = v2d.reshape(B, C_IN * F_EXT)            # contiguous reshape == concat along dim 1
    mask = m2d.reshape(B, 1, H, W)
    return v, mask


# -------------------- plain-JAX reference (correctness check) --------------------

def im2col3x3(x_nhwc):
    b, h, w, c = x_nhwc.shape
    xp = jnp.pad(x_nhwc, ((0, 0), (1, 1), (1, 1), (0, 0)))
    cols = []
    for ky in range(3):
        for kx in range(3):
            cols.append(xp[:, ky:ky + h, kx:kx + w, :])
    return jnp.concatenate(cols, axis=-1).reshape(b * h * w, 9 * c)


def reference_forward(x_nchw, params):
    w1, b1, w2, b2, w_ext, b_ext = params
    x_nhwc = jnp.transpose(x_nchw, (0, 2, 3, 1))
    h1 = jnp.maximum(im2col3x3(x_nhwc) @ w1 + b1, 0.0).reshape(B, H, W, C_MID)
    m = jax.nn.sigmoid(im2col3x3(h1) @ w2 + b2).reshape(B, H, W, 1)
    mask_nchw = jnp.transpose(m, (0, 3, 1, 2))
    mask_flat = mask_nchw.reshape(B, HW)
    vs = []
    for i in range(C_IN):
        d0 = x_nchw[:, i].reshape(B, HW) * mask_flat
        vs.append(jnp.maximum(d0 @ w_ext + b_ext, 0.0))
    return jnp.concatenate(vs, axis=1), mask_nchw


if __name__ == "__main__":
    key = jax.random.PRNGKey(0)
    kp, kx = jax.random.split(key)
    params = init_params(kp)
    packed = pack_params(params)
    x = jax.random.normal(kx, (B, C_IN, H, W), jnp.float32)   # NCHW like PyTorch

    v, mask = encoder_forward(x, packed)
    jax.block_until_ready((v, mask))

    v_ref, mask_ref = reference_forward(x, params)
    assert v.shape == (B, C_IN * F_EXT) and mask.shape == (B, 1, H, W)
    assert jnp.allclose(v, v_ref, atol=1e-4, rtol=1e-4)
    assert jnp.allclose(mask, mask_ref, atol=1e-5, rtol=1e-5)

    print("KERNEL_OK")
</pallas_src>

<mosaic_0001>
module attributes {stable_mosaic.version = 11 : i64} {
  func.func @encoder_fused_kernel(%arg0: memref<8x256xf32, #tpu.memory_space<vmem>>, %arg1: memref<9x256xf32, #tpu.memory_space<vmem>>, %arg2: memref<16x72xf32, #tpu.memory_space<vmem>>, %arg3: memref<16x1xf32, #tpu.memory_space<vmem>>, %arg4: memref<2x144xf32, #tpu.memory_space<vmem>>, %arg5: memref<2x1xf32, #tpu.memory_space<vmem>>, %arg6: memref<256x128xf32, #tpu.memory_space<vmem>>, %arg7: memref<1x128xf32, #tpu.memory_space<vmem>>, %arg8: memref<8x128xf32, #tpu.memory_space<vmem>>, %arg9: memref<2x256xf32, #tpu.memory_space<vmem>>) attributes {dimension_semantics = [], scalar_prefetch = 0 : i64, scratch_operands = 0 : i64, tpu.core_type = #tpu.core_type<tc>} {
    %c0 = arith.constant 0 : index
    %c0_0 = arith.constant 0 : index
    %0 = vector.load %arg0[%c0, %c0_0] : memref<8x256xf32, #tpu.memory_space<vmem>>, vector<8x256xf32>
    %c17_i32 = arith.constant 17 : i32
    %1 = tpu.dynamic_rotate %0 by %c17_i32 dim 1 : vector<8x256xf32>, i32 -> vector<8x256xf32>
    %c0_1 = arith.constant 0 : index
    %c0_2 = arith.constant 0 : index
    %2 = vector.load %arg1[%c0_1, %c0_2] : memref<9x256xf32, #tpu.memory_space<vmem>>, vector<1x256xf32>
    %3 = vector.broadcast %2 : vector<1x256xf32> to vector<8x256xf32>
    %4 = arith.mulf %1, %3 : vector<8x256xf32>
    %c16_i32 = arith.constant 16 : i32
    %5 = tpu.dynamic_rotate %0 by %c16_i32 dim 1 : vector<8x256xf32>, i32 -> vector<8x256xf32>
    %c1 = arith.constant 1 : index
    %c0_3 = arith.constant 0 : index
    %6 = vector.load %arg1[%c1, %c0_3] : memref<9x256xf32, #tpu.memory_space<vmem>>, vector<1x256xf32>
    %7 = vector.broadcast %6 : vector<1x256xf32> to vector<8x256xf32>
    %8 = arith.mulf %5, %7 : vector<8x256xf32>
    %c15_i32 = arith.constant 15 : i32
    %9 = tpu.dynamic_rotate %0 by %c15_i32 dim 1 : vector<8x256xf32>, i32 -> vector<8x256xf32>
    %c2 = arith.constant 2 : index
    %c0_4 = arith.constant 0 : index
    %10 = vector.load %arg1[%c2, %c0_4] : memref<9x256xf32, #tpu.memory_space<vmem>>, vector<1x256xf32>
    %11 = vector.broadcast %10 : vector<1x256xf32> to vector<8x256xf32>
    %12 = arith.mulf %9, %11 : vector<8x256xf32>
    %c1_i32 = arith.constant 1 : i32
    %13 = tpu.dynamic_rotate %0 by %c1_i32 dim 1 : vector<8x256xf32>, i32 -> vector<8x256xf32>
    %c3 = arith.constant 3 : index
    %c0_5 = arith.constant 0 : index
    %14 = vector.load %arg1[%c3, %c0_5] : memref<9x256xf32, #tpu.memory_space<vmem>>, vector<1x256xf32>
    %15 = vector.broadcast %14 : vector<1x256xf32> to vector<8x256xf32>
    %16 = arith.mulf %13, %15 : vector<8x256xf32>
    %c255_i32 = arith.constant 255 : i32
    %17 = tpu.dynamic_rotate %0 by %c255_i32 dim 1 : vector<8x256xf32>, i32 -> vector<8x256xf32>
    %c5 = arith.constant 5 : index
    %c0_6 = arith.constant 0 : index
    %18 = vector.load %arg1[%c5, %c0_6] : memref<9x256xf32, #tpu.memory_space<vmem>>, vector<1x256xf32>
    %19 = vector.broadcast %18 : vector<1x256xf32> to vector<8x256xf32>
    %20 = arith.mulf %17, %19 : vector<8x256xf32>
    %c241_i32 = arith.constant 241 : i32
    %21 = tpu.dynamic_rotate %0 by %c241_i32 dim 1 : vector<8x256xf32>, i32 -> vector<8x256xf32>
    %c6 = arith.constant 6 : index
    %c0_7 = arith.constant 0 : index
    %22 = vector.load %arg1[%c6, %c0_7] : memref<9x256xf32, #tpu.memory_space<vmem>>, vector<1x256xf32>
    %23 = vector.broadcast %22 : vector<1x256xf32> to vector<8x256xf32>
    %24 = arith.mulf %21, %23 : vector<8x256xf32>
    %c240_i32 = arith.constant 240 : i32
    %25 = tpu.dynamic_rotate %0 by %c240_i32 dim 1 : vector<8x256xf32>, i32 -> vector<8x256xf32>
    %c7 = arith.constant 7 : index
    %c0_8 = arith.constant 0 : index
    %26 = vector.load %arg1[%c7, %c0_8] : memref<9x256xf32, #tpu.memory_space<vmem>>, vector<1x256xf32>
    %27 = vector.broadcast %26 : vector<1x256xf32> to vector<8x256xf32>
    %28 = arith.mulf %25, %27 : vector<8x256xf32>
    %c239_i32 = arith.constant 239 : i32
    %29 = tpu.dynamic_rotate %0 by %c239_i32 dim 1 : vector<8x256xf32>, i32 -> vector<8x256xf32>
    %c8 = arith.constant 8 : index
    %c0_9 = arith.constant 0 : index
    %30 = vector.load %arg1[%c8, %c0_9] : memref<9x256xf32, #tpu.memory_space<vmem>>, vector<1x256xf32>
    %31 = vector.broadcast %30 : vector<1x256xf32> to vector<8x256xf32>
    %32 = arith.mulf %29, %31 : vector<8x256xf32>
    %33 = tpu.concatenate %4, %8, %12, %16, %0, %20, %24, %28, %32 in 0 : vector<8x256xf32>, vector<8x256xf32>, vector<8x256xf32>, vector<8x256xf32>, vector<8x256xf32>, vector<8x256xf32>, vector<8x256xf32>, vector<8x256xf32>, vector<8x256xf32> -> vector<72x256xf32>
    %c0_10 = arith.constant 0 : index
    %c0_11 = arith.constant 0 : index
    %34 = vector.load %arg2[%c0_10, %c0_11] : memref<16x72xf32, #tpu.memory_space<vmem>>, vector<16x72xf32>
    %cst = arith.constant dense<0.000000e+00> : vector<16x256xf32>
    %35 = tpu.matmul %34, %33, %cst {dimension_numbers = #tpu.dot_dimension_numbers<[1], [0], [0], [1], [0, 0, 1, 1], [], []>} : vector<16x72xf32>, vector<72x256xf32>, vector<16x256xf32> -> vector<16x256xf32>
    %c0_12 = arith.constant 0 : index
    %c0_13 = arith.constant 0 : index
    %36 = vector.load %arg3[%c0_12, %c0_13] : memref<16x1xf32, #tpu.memory_space<vmem>>, vector<16x1xf32>
    %37 = vector.broadcast %36 : vector<16x1xf32> to vector<16x256xf32>
    %38 = arith.addf %35, %37 : vector<16x256xf32>
    %cst_14 = arith.constant 0.000000e+00 : f32
    %39 = vector.broadcast %cst_14 : f32 to vector<16x256xf32>
    %40 = arith.maximumf %38, %39 : vector<16x256xf32>
    %c17_i32_15 = arith.constant 17 : i32
    %41 = tpu.dynamic_rotate %40 by %c17_i32_15 dim 1 : vector<16x256xf32>, i32 -> vector<16x256xf32>
    %c0_16 = arith.constant 0 : index
    %c0_17 = arith.constant 0 : index
    %42 = vector.load %arg1[%c0_16, %c0_17] : memref<9x256xf32, #tpu.memory_space<vmem>>, vector<1x256xf32>
    %43 = vector.broadcast %42 : vector<1x256xf32> to vector<16x256xf32>
    %44 = arith.mulf %41, %43 : vector<16x256xf32>
    %c16_i32_18 = arith.constant 16 : i32
    %45 = tpu.dynamic_rotate %40 by %c16_i32_18 dim 1 : vector<16x256xf32>, i32 -> vector<16x256xf32>
    %c1_19 = arith.constant 1 : index
    %c0_20 = arith.constant 0 : index
    %46 = vector.load %arg1[%c1_19, %c0_20] : memref<9x256xf32, #tpu.memory_space<vmem>>, vector<1x256xf32>
    %47 = vector.broadcast %46 : vector<1x256xf32> to vector<16x256xf32>
    %48 = arith.mulf %45, %47 : vector<16x256xf32>
    %c15_i32_21 = arith.constant 15 : i32
    %49 = tpu.dynamic_rotate %40 by %c15_i32_21 dim 1 : vector<16x256xf32>, i32 -> vector<16x256xf32>
    %c2_22 = arith.constant 2 : index
    %c0_23 = arith.constant 0 : index
    %50 = vector.load %arg1[%c2_22, %c0_23] : memref<9x256xf32, #tpu.memory_space<vmem>>, vector<1x256xf32>
    %51 = vector.broadcast %50 : vector<1x256xf32> to vector<16x256xf32>
    %52 = arith.mulf %49, %51 : vector<16x256xf32>
    %c1_i32_24 = arith.constant 1 : i32
    %53 = tpu.dynamic_rotate %40 by %c1_i32_24 dim 1 : vector<16x256xf32>, i32 -> vector<16x256xf32>
    %c3_25 = arith.constant 3 : index
    %c0_26 = arith.constant 0 : index
    %54 = vector.load %arg1[%c3_25, %c0_26] : memref<9x256xf32, #tpu.memory_space<vmem>>, vector<1x256xf32>
    %55 = vector.broadcast %54 : vector<1x256xf32> to vector<16x256xf32>
    %56 = arith.mulf %53, %55 : vector<16x256xf32>
    %c255_i32_27 = arith.constant 255 : i32
    %57 = tpu.dynamic_rotate %40 by %c255_i32_27 dim 1 : vector<16x256xf32>, i32 -> vector<16x256xf32>
    %c5_28 = arith.constant 5 : index
    %c0_29 = arith.constant 0 : index
    %58 = vector.load %arg1[%c5_28, %c0_29] : memref<9x256xf32, #tpu.memory_space<vmem>>, vector<1x256xf32>
    %59 = vector.broadcast %58 : vector<1x256xf32> to vector<16x256xf32>
    %60 = arith.mulf %57, %59 : vector<16x256xf32>
    %c241_i32_30 = arith.constant 241 : i32
    %61 = tpu.dynamic_rotate %40 by %c241_i32_30 dim 1 : vector<16x256xf32>, i32 -> vector<16x256xf32>
    %c6_31 = arith.constant 6 : index
    %c0_32 = arith.constant 0 : index
    %62 = vector.load %arg1[%c6_31, %c0_32] : memref<9x256xf32, #tpu.memory_space<vmem>>, vector<1x256xf32>
    %63 = vector.broadcast %62 : vector<1x256xf32> to vector<16x256xf32>
    %64 = arith.mulf %61, %63 : vector<16x256xf32>
    %c240_i32_33 = arith.constant 240 : i32
    %65 = tpu.dynamic_rotate %40 by %c240_i32_33 dim 1 : vector<16x256xf32>, i32 -> vector<16x256xf32>
    %c7_34 = arith.constant 7 : index
    %c0_35 = arith.constant 0 : index
    %66 = vector.load %arg1[%c7_34, %c0_35] : memref<9x256xf32, #tpu.memory_space<vmem>>, vector<1x256xf32>
    %67 = vector.broadcast %66 : vector<1x256xf32> to vector<16x256xf32>
    %68 = arith.mulf %65, %67 : vector<16x256xf32>
    %c239_i32_36 = arith.constant 239 : i32
    %69 = tpu.dynamic_rotate %40 by %c239_i32_36 dim 1 : vector<16x256xf32>, i32 -> vector<16x256xf32>
    %c8_37 = arith.constant 8 : index
    %c0_38 = arith.constant 0 : index
    %70 = vector.load %arg1[%c8_37, %c0_38] : memref<9x256xf32, #tpu.memory_space<vmem>>, vector<1x256xf32>
    %71 = vector.broadcast %70 : vector<1x256xf32> to vector<16x256xf32>
    %72 = arith.mulf %69, %71 : vector<16x256xf32>
    %73 = tpu.concatenate %44, %48, %52, %56, %40, %60, %64, %68, %72 in 0 : vector<16x256xf32>, vector<16x256xf32>, vector<16x256xf32>, vector<16x256xf32>, vector<16x256xf32>, vector<16x256xf32>, vector<16x256xf32>, vector<16x256xf32>, vector<16x256xf32> -> vector<144x256xf32>
    %c0_39 = arith.constant 0 : index
    %c0_40 = arith.constant 0 : index
    %74 = vector.load %arg4[%c0_39, %c0_40] : memref<2x144xf32, #tpu.memory_space<vmem>>, vector<2x144xf32>
    %cst_41 = arith.constant dense<0.000000e+00> : vector<2x256xf32>
    %75 = tpu.matmul %74, %73, %cst_41 {dimension_numbers = #tpu.dot_dimension_numbers<[1], [0], [0], [1], [0, 0, 1, 1], [], []>} : vector<2x144xf32>, vector<144x256xf32>, vector<2x256xf32> -> vector<2x256xf32>
    %c0_42 = arith.constant 0 : index
    %c0_43 = arith.constant 0 : index
    %76 = vector.load %arg5[%c0_42, %c0_43] : memref<2x1xf32, #tpu.memory_space<vmem>>, vector<2x1xf32>
    %77 = vector.broadcast %76 : vector<2x1xf32> to vector<2x256xf32>
    %78 = arith.addf %75, %77 : vector<2x256xf32>
    %79 = arith.negf %78 : vector<2x256xf32>
    %80 = math.exp %79 : vector<2x256xf32>
    %cst_44 = arith.constant 1.000000e+00 : f32
    %81 = vector.broadcast %cst_44 : f32 to vector<2x256xf32>
    %82 = arith.addf %81, %80 : vector<2x256xf32>
    %83 = arith.divf %81, %82 : vector<2x256xf32>
    %c0_45 = arith.constant 0 : index
    %c0_46 = arith.constant 0 : index
    %84 = vector.load %arg9[%c0_45, %c0_46] : memref<2x256xf32, #tpu.memory_space<vmem>>, vector<2x256xf32>
    tpu.vector_store %arg9[%c0_45, %c0_46], %83 {strides = array<i32>} : memref<2x256xf32, #tpu.memory_space<vmem>>, vector<2x256xf32>,
    %85 = vector.extract_strided_slice %83 {offsets = [0, 0], sizes = [1, 256], strides = [1, 1]} : vector<2x256xf32> to vector<1x256xf32>
    %86 = vector.shape_cast %85 : vector<1x256xf32> to vector<1x256xf32>
    %87 = vector.broadcast %86 : vector<1x256xf32> to vector<4x256xf32>
    %88 = vector.extract_strided_slice %83 {offsets = [1, 0], sizes = [1, 256], strides = [1, 1]} : vector<2x256xf32> to vector<1x256xf32>
    %89 = vector.shape_cast %88 : vector<1x256xf32> to vector<1x256xf32>
    %90 = vector.broadcast %89 : vector<1x256xf32> to vector<4x256xf32>
    %91 = tpu.concatenate %87, %90 in 0 : vector<4x256xf32>, vector<4x256xf32> -> vector<8x256xf32>
    %92 = arith.mulf %0, %91 : vector<8x256xf32>
    %c0_47 = arith.constant 0 : index
    %c0_48 = arith.constant 0 : index
    %93 = vector.load %arg6[%c0_47, %c0_48] : memref<256x128xf32, #tpu.memory_space<vmem>>, vector<256x128xf32>
    %cst_49 = arith.constant dense<0.000000e+00> : vector<8x128xf32>
    %94 = tpu.matmul %92, %93, %cst_49 {dimension_numbers = #tpu.dot_dimension_numbers<[1], [0], [0], [1], [0, 0, 1, 1], [], []>} : vector<8x256xf32>, vector<256x128xf32>, vector<8x128xf32> -> vector<8x128xf32>
    %c0_50 = arith.constant 0 : index
    %c0_51 = arith.constant 0 : index
    %95 = vector.load %arg7[%c0_50, %c0_51] : memref<1x128xf32, #tpu.memory_space<vmem>>, vector<1x128xf32>
    %96 = vector.broadcast %95 : vector<1x128xf32> to vector<8x128xf32>
    %97 = arith.addf %94, %96 : vector<8x128xf32>
    %cst_52 = arith.constant 0.000000e+00 : f32
    %98 = vector.broadcast %cst_52 : f32 to vector<8x128xf32>
    %99 = arith.maximumf %97, %98 : vector<8x128xf32>
    %c0_53 = arith.constant 0 : index
    %c0_54 = arith.constant 0 : index
    %100 = vector.load %arg8[%c0_53, %c0_54] : memref<8x128xf32, #tpu.memory_space<vmem>>, vector<8x128xf32>
    tpu.vector_store %arg8[%c0_53, %c0_54], %99 {strides = array<i32>} : memref<8x128xf32, #tpu.memory_space<vmem>>, vector<8x128xf32>,
    return
  }
}

</mosaic_0001>

<bundles_post_ra>
// kernel: encoder_forward.1
= control target key start
LH: loop header
LB: loop body
LE: loop exit
PB: predicated region body
PF: predicated region fallthrough
CT: control target
= control target key end

     0   :  { %15 = vsyncpa [#allocation3], 0  ;;  %s678_s12 = smov [#allocation2]   ;;  %s679_s14 = smov 128   ;;  %s1176_s0 = inlined_call_operand.vmem [shape: f32[8,256], index: 0, kind: input, shape index: {}]   ;;  %s1177_s1 = inlined_call_operand.vmem [shape: f32[9,256], index: 1, kind: input, shape index: {}]   ;;  %s1178_s2 = inlined_call_operand.vmem [shape: f32[16,72], index: 2, kind: input, shape index: {}]   ;;  %s1179_s3 = inlined_call_operand.vmem [shape: f32[16,1], index: 3, kind: input, shape index: {}]   ;;  %s1180_s4 = inlined_call_operand.vmem [shape: f32[2,144], index: 4, kind: input, shape index: {}]   ;;  %s1181_s5 = inlined_call_operand.vmem [shape: f32[2,1], index: 5, kind: input, shape index: {}]   ;;  %s1182_s6 = inlined_call_operand.hbm [shape: f32[256,128], index: 6, kind: input, shape index: {}]   ;;  %s1183_s7 = inlined_call_operand.vmem [shape: f32[1,128], index: 7, kind: input, shape index: {}]   ;;  %s1184_s8 = inlined_call_operand.vmem [shape: f32[8,128], index: 8, kind: output, shape index: {0}]   ;;  %s1185_s9 = inlined_call_operand.vmem [shape: f32[2,256], index: 9, kind: output, shape index: {1}]  }
   0x1   :  { %s32_s11 = sshll.u32 %s1182_s6, 4  ;;  %s34_s13 = sshll.u32 %s678_s12, 4  ;;  %s33_s11 = int_to_ptr.hbm [resolvable:$true] %s32_s11  ;;  %s35_s13 = int_to_ptr.vmem [resolvable:$true] %s34_s13 }
   0x2   :  { %s680_s15 = smov 8  }
   0x3   :  { %40 = dma.hbm_to_vmem [thread:$0]  %s33_s11, 4096, %s35_s13, [#allocation3], %s679_s14, %s679_s14, %s680_s15  }
   0x4   :  { %676 = dma.done.wait [#allocation3], 4096  }
   0x5   :  { %677 = vsyncadd [#allocation3], 4294963200  ;;  %v746_v0 = vld [vmem:[%s1176_s0] sm:$0xff]  ;;  %s681_s18 = smov 112   ;;  %s682_s19 = smov 111   ;;  %v757_v1 = vld [vmem:[%s1176_s0 + $0x8] sm:$0xff]  ;;  %v53_v3 = vlaneseq }
   0x6   :  { %146 = vrot.lane.b32.xlu1 %v746_v0, %s681_s18  ;;  %162 = vrot.lane.b32.xlu0 %v746_v0, %s682_s19  ;;  %s683_s6 = smov 113   ;;  %s684_s22 = smov 127   ;;  %v619_v7 = vld [vmem:[%s1177_s1 + $0x10] ss:$8 sm:$0x3]  ;;  %v180_v44 = vld [vmem:[%s1179_s3] sm:$0xff] }
   0x7   :  { %130 = vrot.lane.b32.xlu2 %v746_v0, %s683_s6  ;;  %s685_s23 = smov 1   ;;  %s686_s0 = smov 15   ;;  %v785_v6 = vand.u32 127, %v53_v3  ;;  %v618_v9 = vld [vmem:[%s1177_s1 + $0x7] ss:$8 sm:$0x3] }
   0x8   :  { %s687_s24 = smov 16   ;;  %s688_s25 = smov 17   ;;  %v795_v10 = vperm.slane %v619_v7, 0  ;;  %v797_v11 = vperm.slane %v619_v7, 1  ;;  %v803_v15 = vperm.slane %v618_v9, 0  ;;  %v805_v16 = vperm.slane %v618_v9, 1 }
   0x9   :  { %vm150_vm0 = vcmp.lt.s32.totalorder %v785_v6, 112  ;;  %vm166_vm1 = vcmp.lt.s32.totalorder %v785_v6, 111  ;;  %v617_v12 = vld [vmem:[%s1177_s1 + $0x6] ss:$8 sm:$0x3]  ;;  %vm134_vm2 = vcmp.lt.s32.totalorder %v785_v6, 113 }
   0xa   :  { %v817_v23 = vperm.slane %v617_v12, 0  ;;  %v819_v24 = vperm.slane %v617_v12, 1  ;;  %v616_v27 = vld [vmem:[%s1177_s1 + $0x5] ss:$8 sm:$0x3]  ;;  %vm118_vm3 = vcmp.lt.s32.totalorder %v785_v6, 127 }
   0xb   :  { %v833_v33 = vperm.slane %v616_v27, 0  ;;  %v835_v34 = vperm.slane %v616_v27, 1  ;;  %v615_v41 = vld [vmem:[%s1177_s1 + $0x3] ss:$8 sm:$0x3]  ;;  %vm102_vm4 = vcmp.lt.s32.totalorder %v785_v6, 1 }
   0xc   :  { %v614_v42 = vld [vmem:[%s1177_s1 + $0x2] ss:$8 sm:$0x3]  ;;  %v850_v43 = vperm.slane %v615_v41, 0  ;;  %v860_v46 = vperm.slane %v615_v41, 1  ;;  %vm86_vm5 = vcmp.lt.s32.totalorder %v785_v6, 15 }
   0xd   :  { %v181_v45 = vld [vmem:[%s1179_s3 + $0x8] sm:$0xff]  ;;  %v863_v48 = vperm.slane %v614_v42, 0  ;;  %v865_v49 = vperm.slane %v614_v42, 1  ;;  %v689_v50 = vmov 0   ;;  %vm70_vm6 = vcmp.lt.s32.totalorder %v785_v6, 16 }
   0xe   :  { %148 = vrot.lane.b32.xlu1 %v757_v1, %s681_s18  ;;  %164 = vrot.lane.b32.xlu0 %v757_v1, %s682_s19  ;;  %v613_v61 = vld [vmem:[%s1177_s1 + $0x1] ss:$8 sm:$0x3]  ;;  %v58_v9 = vld [vmem:[%s1177_s1] ss:$8 sm:$0x3] }
   0xf   :  { %132 = vrot.lane.b32.xlu2 %v757_v1, %s683_s6  ;;  %640 = vset.pattern.permute.xlu1 %v689_v50  ;;  %v883_v62 = vperm.slane %v613_v61, 0  ;;  %v885_v63 = vperm.slane %v613_v61, 1  ;;  %vm55_vm7 = vcmp.lt.s32.totalorder %v785_v6, 17  ;;  %vm192_vm8 = vcmask 588800   ;;  %v378_v42 = vld [vmem:[%s1181_s5] sm:$0x3] }
  0x10   :  { %641 = vset.pattern.permute.xlu2 %v689_v50  ;;  %642 = vset.pattern.permute.xlu0 %v689_v50  ;;  %vm389_vm9 = vcmask 130048   ;;  %v536_v6 = vld [vmem:[#allocation2 + $0x50] sm:$0xff]  ;;  %vm521_vm14 = vcmask 1043456  }
  0x16   :  { %116 = vrot.lane.b32.xlu1 %v757_v1, %s684_s22  ;;  %114 = vrot.lane.b32.xlu0 %v746_v0, %s684_s22 }
  0x17   :  { %98 = vrot.lane.b32.xlu2 %v746_v0, %s685_s23 }
  0x1e   :  { %82 = vrot.lane.b32.xlu1 %v746_v0, %s686_s0  ;;  %100 = vrot.lane.b32.xlu0 %v757_v1, %s685_s23 }
  0x1f   :  { %84 = vrot.lane.b32.xlu2 %v757_v1, %s686_s0 }
  0x26   :  { %68 = vrot.lane.b32.xlu1 %v757_v1, %s687_s24  ;;  %66 = vrot.lane.b32.xlu0 %v746_v0, %s687_s24 }
  0x27   :  { %49 = vrot.lane.b32.xlu2 %v746_v0, %s688_s25 }
  0x2e   :  { %51 = vrot.lane.b32.xlu0 %v757_v1, %s688_s25  ;;  %189 = vperm.xlu1 %640, %v181_v45  }
  0x2f   :  { %184 = vperm.xlu2 %641, %v180_v44  }
  0x61   :  { %v131_v2 = vpop.permute.xlu2 %130 }
  0x69   :  { %v133_v8 = vpop.permute.xlu2 %132 }
  0x6a   :  { %v135_v25 = vsel %vm134_vm2, %v131_v2, %v133_v8  ;;  %v136_v26 = vsel %vm134_vm2, %v133_v8, %v131_v2 }
  0x6b   :  { %v144_v31 = vmul.f32 %v817_v23, %v135_v25  ;;  %v145_v32 = vmul.f32 %v819_v24, %v136_v26  ;;  %v179_v25 = vld [vmem:[%s1178_s2 + $0x8] sm:$0xff] }
  0x71   :  { %v99_v30 = vpop.permute.xlu2 %98 }
  0x78   :  { %v147_v4 = vpop.permute.xlu1 %146  ;;  %v163_v5 = vpop.permute.xlu0 %162 }
  0x79   :  { %v85_v47 = vpop.permute.xlu2 %84 }
  0x80   :  { %v149_v13 = vpop.permute.xlu1 %148  ;;  %v165_v14 = vpop.permute.xlu0 %164 }
  0x81   :  { %v151_v17 = vsel %vm150_vm0, %v147_v4, %v149_v13  ;;  %v152_v18 = vsel %vm150_vm0, %v149_v13, %v147_v4  ;;  %v167_v19 = vsel %vm166_vm1, %v163_v5, %v165_v14  ;;  %v168_v20 = vsel %vm166_vm1, %v165_v14, %v163_v5  ;;  %v50_v12 = vpop.permute.xlu2 %49 }
  0x82   :  { %v176_v21 = vmul.f32 %v795_v10, %v167_v19  ;;  %v177_v22 = vmul.f32 %v797_v11, %v168_v20  ;;  %v160_v28 = vmul.f32 %v803_v15, %v151_v17  ;;  %v161_v29 = vmul.f32 %v805_v16, %v152_v18 }
  0x83   :  { %v897_v13 = vperm.slane %v58_v9, 0  ;;  %v899_v14 = vperm.slane %v58_v9, 1 }
  0x84   :  { %206 = vmatpush.msra.mxu2 %v176_v21  ;;  %229 = vmatpush.msra.mxu1 %v177_v22  ;;  %v178_v22 = vld [vmem:[%s1178_s2] sm:$0xff] }
  0x86   :  { %207 = vmatpush.msra.mxu2 %v160_v28  ;;  %230 = vmatpush.msra.mxu1 %v161_v29 }
  0x88   :  { %v117_v35 = vpop.permute.xlu1 %116  ;;  %208 = vmatpush.msra.mxu2 %v144_v31  ;;  %231 = vmatpush.msra.mxu1 %v145_v32  ;;  %v115_v36 = vpop.permute.xlu0 %114 }
  0x89   :  { %v119_v37 = vsel %vm118_vm3, %v115_v36, %v117_v35  ;;  %v120_v38 = vsel %vm118_vm3, %v117_v35, %v115_v36  ;;  %v185_v26 = vpop.permute.xlu2 %184 }
  0x8a   :  { %v128_v39 = vmul.f32 %v833_v33, %v119_v37  ;;  %v129_v40 = vmul.f32 %v835_v34, %v120_v38 }
  0x8c   :  { %209 = vmatpush.msra.mxu2 %v128_v39  ;;  %232 = vmatpush.msra.mxu1 %v129_v40 }
  0x8e   :  { %210 = vmatpush.msra.mxu2 %v746_v0  ;;  %233 = vmatpush.msra.mxu1 %v757_v1 }
  0x90   :  { %v83_v51 = vpop.permute.xlu1 %82  ;;  %v101_v52 = vpop.permute.xlu0 %100 }
  0x91   :  { %v103_v53 = vsel %vm102_vm4, %v99_v30, %v101_v52  ;;  %v104_v54 = vsel %vm102_vm4, %v101_v52, %v99_v30  ;;  %v87_v55 = vsel %vm86_vm5, %v83_v51, %v85_v47  ;;  %v88_v56 = vsel %vm86_vm5, %v85_v47, %v83_v51 }
  0x92   :  { %v112_v57 = vmul.f32 %v850_v43, %v104_v54  ;;  %v113_v58 = vmul.f32 %v860_v46, %v103_v53  ;;  %v96_v59 = vmul.f32 %v863_v48, %v88_v56  ;;  %v97_v60 = vmul.f32 %v865_v49, %v87_v55 }
  0x94   :  { %211 = vmatpush.msra.mxu2 %v112_v57  ;;  %234 = vmatpush.msra.mxu1 %v113_v58 }
  0x96   :  { %212 = vmatpush.msra.mxu2 %v96_v59  ;;  %235 = vmatpush.msra.mxu1 %v97_v60 }
  0x98   :  { %v69_v2 = vpop.permute.xlu1 %68  ;;  %v67_v3 = vpop.permute.xlu0 %66 }
  0x99   :  { %v71_v4 = vsel %vm70_vm6, %v67_v3, %v69_v2  ;;  %v72_v5 = vsel %vm70_vm6, %v69_v2, %v67_v3 }
  0x9a   :  { %v80_v7 = vmul.f32 %v883_v62, %v72_v5  ;;  %v81_v8 = vmul.f32 %v885_v63, %v71_v4 }
  0x9c   :  { %213 = vmatpush.msra.mxu2 %v80_v7  ;;  %236 = vmatpush.msra.mxu1 %v81_v8  ;;  %v377_v8 = vld [vmem:[%s1180_s4] sm:$0xf] }
  0x9d   :  { %385 = vst [vmem:[#allocation1] ss:$4 sm:$0xff] %v377_v8 }
  0xa0   :  { %v52_v17 = vpop.permute.xlu0 %51  ;;  %v190_v35 = vpop.permute.xlu1 %189 }
  0xa1   :  { %v56_v18 = vsel %vm55_vm7, %v50_v12, %v52_v17  ;;  %v57_v19 = vsel %vm55_vm7, %v52_v17, %v50_v12 }
  0xa2   :  { %v64_v20 = vmul.f32 %v897_v13, %v57_v19  ;;  %v65_v21 = vmul.f32 %v899_v14, %v56_v18 }
  0xa4   :  { %214 = vmatpush.msra.mxu2 %v64_v20  ;;  %237 = vmatpush.msra.mxu1 %v65_v21 }
  0xa5   :  { %620 = vmatmul.msk.f32.vlgmr.msra.gmra.mxu2 %vm192_vm8, %v178_v22  ;;  %622 = vmatmul.msk.f32.vlgmr.msra.gmra.mxu1 %vm192_vm8, %v178_v22 }
  0xad   :  { %623 = vmatmul.msk.f32.gmra.mxu1 %vm192_vm8, %v179_v25  ;;  %621 = vmatmul.msk.f32.gmra.mxu2 %vm192_vm8, %v179_v25 }
 0x122   :  { %v239_v27 = vpop.f32.mrf.mxu1 }
 0x123   :  { %v240_v28 = vadd.f32 %v239_v27, %v185_v26 }
 0x125   :  { %v913_v29 = vmax.f32 %v240_v28, 0.0 }
 0x127   :  { %317 = vrot.lane.b32.xlu2 %v913_v29, %s684_s22  ;;  %333 = vrot.lane.b32.xlu1 %v913_v29, %s683_s6 }
 0x128   :  { %349 = vrot.lane.b32.xlu0 %v913_v29, %s681_s18  ;;  %v216_v30 = vpop.f32.mrf.mxu2 }
 0x129   :  { %v217_v31 = vadd.f32 %v216_v30, %v185_v26 }
 0x12a   :  { %v242_v36 = vpop.f32.mrf.mxu1 }
 0x12b   :  { %v921_v32 = vmax.f32 %v217_v31, 0.0  ;;  %v243_v37 = vadd.f32 %v242_v36, %v190_v35 }
 0x12d   :  { %v935_v38 = vmax.f32 %v243_v37, 0.0 }
 0x12f   :  { %345 = vrot.lane.b32.xlu2 %v921_v32, %s681_s18  ;;  %313 = vrot.lane.b32.xlu1 %v921_v32, %s684_s22 }
 0x130   :  { %301 = vrot.lane.b32.xlu0 %v913_v29, %s685_s23  ;;  %v219_v39 = vpop.f32.mrf.mxu2 }
 0x131   :  { %v220_v40 = vadd.f32 %v219_v39, %v190_v35 }
 0x133   :  { %v949_v41 = vmax.f32 %v220_v40, 0.0 }
 0x137   :  { %297 = vrot.lane.b32.xlu2 %v921_v32, %s685_s23  ;;  %361 = vrot.lane.b32.xlu1 %v921_v32, %s682_s19 }
 0x138   :  { %285 = vrot.lane.b32.xlu0 %v913_v29, %s686_s0 }
 0x13f   :  { %281 = vrot.lane.b32.xlu2 %v921_v32, %s686_s0  ;;  %351 = vrot.lane.b32.xlu1 %v935_v38, %s681_s18 }
 0x140   :  { %329 = vrot.lane.b32.xlu0 %v921_v32, %s683_s6 }
 0x147   :  { %335 = vrot.lane.b32.xlu2 %v935_v38, %s683_s6  ;;  %303 = vrot.lane.b32.xlu1 %v935_v38, %s685_s23 }
 0x148   :  { %319 = vrot.lane.b32.xlu0 %v935_v38, %s684_s22 }
 0x14f   :  { %287 = vrot.lane.b32.xlu2 %v935_v38, %s686_s0  ;;  %367 = vrot.lane.b32.xlu1 %v935_v38, %s682_s19 }
 0x150   :  { %347 = vrot.lane.b32.xlu0 %v949_v41, %s681_s18 }
 0x157   :  { %315 = vrot.lane.b32.xlu2 %v949_v41, %s684_s22  ;;  %331 = vrot.lane.b32.xlu1 %v949_v41, %s683_s6 }
 0x158   :  { %269 = vrot.lane.b32.xlu0 %v913_v29, %s687_s24 }
 0x15f   :  { %365 = vrot.lane.b32.xlu2 %v913_v29, %s682_s19  ;;  %271 = vrot.lane.b32.xlu1 %v935_v38, %s687_s24 }
 0x160   :  { %299 = vrot.lane.b32.xlu0 %v949_v41, %s685_s23 }
 0x167   :  { %265 = vrot.lane.b32.xlu2 %v921_v32, %s687_s24  ;;  %283 = vrot.lane.b32.xlu1 %v949_v41, %s686_s0 }
 0x168   :  { %363 = vrot.lane.b32.xlu0 %v949_v41, %s682_s19 }
 0x16f   :  { %255 = vrot.lane.b32.xlu2 %v935_v38, %s688_s25  ;;  %251 = vrot.lane.b32.xlu1 %v949_v41, %s688_s25 }
 0x170   :  { %267 = vrot.lane.b32.xlu0 %v949_v41, %s687_s24 }
 0x177   :  { %381 = vperm.xlu2 %641, %v378_v42   ;;  %253 = vrot.lane.b32.xlu1 %v913_v29, %s688_s25 }
 0x178   :  { %249 = vrot.lane.b32.xlu0 %v921_v32, %s688_s25 }
 0x181   :  { %v318_v44 = vpop.permute.xlu2 %317 }
 0x189   :  { %v988_v45 = vpop.permute.xlu2 %345 }
 0x191   :  { %v298_v51 = vpop.permute.xlu2 %297 }
 0x199   :  { %v990_v47 = vpop.permute.xlu1 %333  ;;  %v1002_v56 = vpop.permute.xlu2 %281 }
 0x19a   :  { %v992_v50 = vpop.permute.xlu0 %349 }
 0x19b   :  { %v353_v9 = vsel %vm150_vm0, %v988_v45, %v992_v50 }
 0x19c   :  { %v357_v19 = vmul.f32 %v353_v9, %v803_v15 }
 0x1a1   :  { %v314_v52 = vpop.permute.xlu1 %313  ;;  %v336_v60 = vpop.permute.xlu2 %335 }
 0x1a2   :  { %v996_v53 = vsel %vm118_vm3, %v318_v44, %v314_v52  ;;  %v302_v54 = vpop.permute.xlu0 %301  ;;  %v321_v28 = vsel %vm118_vm3, %v314_v52, %v318_v44 }
 0x1a3   :  { %v1000_v55 = vsel %vm102_vm4, %v298_v51, %v302_v54  ;;  %v325_v36 = vmul.f32 %v321_v28, %v833_v33 }
 0x1a9   :  { %v1004_v57 = vpop.permute.xlu1 %361  ;;  %v1014_v4 = vpop.permute.xlu2 %287 }
 0x1aa   :  { %v1006_v58 = vpop.permute.xlu0 %285 }
 0x1ab   :  { %v291_v44 = vsel %vm86_vm5, %v1006_v58, %v1002_v56 }
 0x1b1   :  { %v352_v59 = vpop.permute.xlu1 %351  ;;  %v316_v18 = vpop.permute.xlu2 %315 }
 0x1b2   :  { %v1008_v61 = vpop.permute.xlu0 %329 }
 0x1b3   :  { %v337_v21 = vsel %vm134_vm2, %v1008_v61, %v990_v47 }
 0x1b9   :  { %v1010_v2 = vpop.permute.xlu1 %303  ;;  %v1045_v31 = vpop.permute.xlu2 %365 }
 0x1ba   :  { %v1012_v3 = vpop.permute.xlu0 %319 }
 0x1bb   :  { %v322_v27 = vsel %vm118_vm3, %v316_v18, %v1012_v3 }
 0x1bc   :  { %v327_v30 = vmul.f32 %v322_v27, %v833_v33 }
 0x1c1   :  { %v1016_v5 = vpop.permute.xlu1 %367  ;;  %v1065_v52 = vpop.permute.xlu2 %265 }
 0x1c2   :  { %v348_v7 = vpop.permute.xlu0 %347 }
 0x1c3   :  { %v354_v12 = vsel %vm150_vm0, %v348_v7, %v352_v59  ;;  %v356_v8 = vsel %vm150_vm0, %v352_v59, %v348_v7 }
 0x1c4   :  { %v359_v17 = vmul.f32 %v354_v12, %v803_v15  ;;  %v341_v15 = vmul.f32 %v337_v21, %v817_v23  ;;  %v293_v12 = vmul.f32 %v291_v44, %v863_v48  ;;  %v360_v21 = vmul.f32 %v356_v8, %v805_v16  ;;  %v535_v44 = vld [vmem:[#allocation2 + $0x48] sm:$0xff]  ;;  %v529_v8 = vld [vmem:[#allocation2 + $0x18] sm:$0xff] }
 0x1c6   :  { %392 = vmatpush.msra.mxu0 %v359_v17  ;;  %v355_v17 = vsel %vm150_vm0, %v992_v50, %v988_v45  ;;  %v339_v45 = vsel %vm134_vm2, %v990_v47, %v1008_v61 }
 0x1c7   :  { %v342_v27 = vmul.f32 %v339_v45, %v819_v24 }
 0x1c8   :  { %393 = vmatpush.msra.mxu0 %v357_v19 }
 0x1c9   :  { %v332_v20 = vpop.permute.xlu1 %331  ;;  %v256_v47 = vpop.permute.xlu2 %255 }
 0x1ca   :  { %v338_v22 = vsel %vm134_vm2, %v332_v20, %v336_v60  ;;  %v1035_v25 = vpop.permute.xlu0 %269  ;;  %v340_v59 = vsel %vm134_vm2, %v336_v60, %v332_v20  ;;  %v324_v20 = vsel %vm118_vm3, %v1012_v3, %v316_v18  ;;  %v326_v18 = vmul.f32 %v996_v53, %v835_v34 }
 0x1cb   :  { %v343_v26 = vmul.f32 %v338_v22, %v817_v23  ;;  %v307_v23 = vsel %vm102_vm4, %v302_v54, %v298_v51  ;;  %v369_v51 = vsel %vm166_vm1, %v1004_v57, %v1045_v31  ;;  %v387_v22 = vld.sshfl [vmem:[#allocation1 + $0x8] sm:$0xff pattern:$0x73625140]  ;;  %v328_v28 = vmul.f32 %v324_v20, %v835_v34 }
 0x1cc   :  { %v309_v33 = vmul.f32 %v307_v23, %v850_v43  ;;  %v373_v19 = vmul.f32 %v369_v51, %v795_v10  ;;  %v371_v34 = vsel %vm166_vm1, %v1045_v31, %v1004_v57  ;;  %v289_v57 = vsel %vm86_vm5, %v1002_v56, %v1006_v58  ;;  %v530_v51 = vld [vmem:[#allocation2 + $0x20] sm:$0xff] }
 0x1cd   :  { %394 = vmatpush.msra.mxu0 %v343_v26  ;;  %v550_v20 = vld [vmem:[#allocation2 + $0xc0] sm:$0xff]  ;;  %vm513_vm3 = vcmask 1041408  }
 0x1cf   :  { %395 = vmatpush.msra.mxu0 %v341_v15 }
 0x1d1   :  { %v1047_v35 = vpop.permute.xlu1 %271  ;;  %396 = vmatpush.msra.mxu0 %v327_v30 }
 0x1d2   :  { %v300_v37 = vpop.permute.xlu0 %299 }
 0x1d3   :  { %397 = vmatpush.msra.mxu0 %v325_v36  ;;  %v308_v39 = vsel %vm102_vm4, %v1010_v2, %v300_v37 }
 0x1d4   :  { %v311_v40 = vmul.f32 %v308_v39, %v850_v43  ;;  %v306_v39 = vsel %vm102_vm4, %v300_v37, %v1010_v2  ;;  %v374_v2 = vmul.f32 %v371_v34, %v797_v11  ;;  %v540_v37 = vld [vmem:[#allocation2 + $0x70] sm:$0xff] }
 0x1d5   :  { %398 = vmatpush.msra.mxu0 %v949_v41 }
 0x1d7   :  { %399 = vmatpush.msra.mxu0 %v921_v32 }
 0x1d9   :  { %v1058_v42 = vpop.permute.xlu1 %283  ;;  %400 = vmatpush.msra.mxu0 %v311_v40  ;;  %v386_v40 = vld.sshfl [vmem:[#allocation1] sm:$0xff pattern:$0x73625140] }
 0x1da   :  { %v292_v41 = vsel %vm86_vm5, %v1014_v4, %v1058_v42  ;;  %v364_v32 = vpop.permute.xlu0 %363 }
 0x1db   :  { %401 = vmatpush.msra.mxu0 %v309_v33  ;;  %v295_v43 = vmul.f32 %v292_v41, %v863_v48  ;;  %v370_v54 = vsel %vm166_vm1, %v364_v32, %v1016_v5  ;;  %v358_v48 = vmul.f32 %v355_v17, %v805_v16  ;;  %v344_v16 = vmul.f32 %v340_v59, %v819_v24  ;;  %v538_v33 = vld [vmem:[#allocation2 + $0x60] sm:$0xff]  ;;  %v533_v41 = vld [vmem:[#allocation2 + $0x38] sm:$0xff]  ;;  %v556_v17 = vld [vmem:[#allocation2 + $0xf0] sm:$0xff] }
 0x1dc   :  { %v375_v9 = vmul.f32 %v370_v54, %v795_v10  ;;  %v275_v10 = vsel %vm70_vm6, %v1035_v25, %v1065_v52  ;;  %v372_v24 = vsel %vm166_vm1, %v1016_v5, %v364_v32  ;;  %v312_v5 = vmul.f32 %v306_v39, %v860_v46  ;;  %v531_v32 = vld [vmem:[#allocation2 + $0x28] sm:$0xff]  ;;  %v382_v54 = vpop.permute.xlu2 %381 }
 0x1dd   :  { %402 = vmatpush.msra.mxu0 %v295_v43  ;;  %v277_v15 = vmul.f32 %v275_v10, %v883_v62  ;;  %v376_v53 = vmul.f32 %v372_v24, %v797_v11  ;;  %v294_v11 = vmul.f32 %v289_v57, %v865_v49  ;;  %v557_v43 = vld [vmem:[#allocation2 + $0xf8] sm:$0xff] }
 0x1de   :  { %426 = vmatpush.msra.mxu3 %v375_v9  ;;  %582 = vmatpush.msrb.mxu2 %v557_v43  ;;  %v553_v10 = vld [vmem:[#allocation2 + $0xd8] sm:$0xff] }
 0x1df   :  { %403 = vmatpush.msra.mxu0 %v293_v12 }
 0x1e0   :  { %427 = vmatpush.msra.mxu3 %v373_v19  ;;  %583 = vmatpush.msrb.mxu2 %v556_v17 }
 0x1e1   :  { %v252_v7 = vpop.permute.xlu1 %251  ;;  %624 = vmatmul.msk.f32.vlgmr.msra.gmra.mxu3 %vm389_vm9, %v387_v22 }
 0x1e2   :  { %432 = vmatpush.msrb.mxu3 %v360_v21  ;;  %v268_v50 = vpop.permute.xlu0 %267  ;;  %v260_v26 = vsel %vm55_vm7, %v256_v47, %v252_v7  ;;  %v258_v56 = vsel %vm55_vm7, %v252_v7, %v256_v47  ;;  %v528_v21 = vld [vmem:[#allocation2 + $0x10] sm:$0xff]  ;;  %v527_v7 = vld [vmem:[#allocation2 + $0x8] sm:$0xff] }
 0x1e3   :  { %v276_v60 = vsel %vm70_vm6, %v1047_v35, %v268_v50  ;;  %v263_v30 = vmul.f32 %v260_v26, %v897_v13  ;;  %v549_v26 = vld [vmem:[#allocation2 + $0xb8] sm:$0xff] }
 0x1e4   :  { %433 = vmatpush.msrb.mxu3 %v358_v48  ;;  %v279_v61 = vmul.f32 %v276_v60, %v883_v62  ;;  %v554_v48 = vld [vmem:[#allocation2 + $0xe0] sm:$0xff]  ;;  %v552_v60 = vld [vmem:[#allocation2 + $0xd0] sm:$0xff] }
 0x1e6   :  { %434 = vmatpush.msrb.mxu3 %v344_v16  ;;  %404 = vmatpush.msra.mxu0 %v279_v61  ;;  %v551_v16 = vld [vmem:[#allocation2 + $0xc8] sm:$0xff] }
 0x1e8   :  { %435 = vmatpush.msrb.mxu3 %v342_v27  ;;  %405 = vmatpush.msra.mxu0 %v277_v15  ;;  %v548_v27 = vld [vmem:[#allocation2 + $0xb0] sm:$0xff]  ;;  %v547_v15 = vld [vmem:[#allocation2 + $0xa8] sm:$0xff] }
 0x1e9   :  { %v254_v3 = vpop.permute.xlu1 %253 }
 0x1ea   :  { %436 = vmatpush.msrb.mxu3 %v328_v28  ;;  %406 = vmatpush.msra.mxu0 %v263_v30  ;;  %v250_v36 = vpop.permute.xlu0 %249  ;;  %v546_v28 = vld [vmem:[#allocation2 + $0xa0] sm:$0xff]  ;;  %v545_v30 = vld [vmem:[#allocation2 + $0x98] sm:$0xff] }
 0x1eb   :  { %v259_v62 = vsel %vm55_vm7, %v254_v3, %v250_v36  ;;  %v257_v31 = vsel %vm55_vm7, %v250_v36, %v254_v3 }
 0x1ec   :  { %437 = vmatpush.msrb.mxu3 %v326_v18  ;;  %v261_v23 = vmul.f32 %v259_v62, %v897_v13  ;;  %v290_v13 = vsel %vm86_vm5, %v1058_v42, %v1014_v4  ;;  %v274_v4 = vsel %vm70_vm6, %v268_v50, %v1047_v35  ;;  %v541_v35 = vld [vmem:[#allocation2 + $0x78] sm:$0xff]  ;;  %v539_v42 = vld [vmem:[#allocation2 + $0x68] sm:$0xff]  ;;  %v526_v50 = vld [vmem:[#allocation2] sm:$0xff] }
 0x1ed   :  { %562 = vmatpush.msrb.mxu1 %v541_v35  ;;  %v544_v18 = vld [vmem:[#allocation2 + $0x90] sm:$0xff] }
 0x1ee   :  { %438 = vmatpush.msrb.mxu3 %v935_v38  ;;  %407 = vmatpush.msra.mxu0 %v261_v23  ;;  %v310_v38 = vmul.f32 %v1000_v55, %v860_v46  ;;  %v273_v46 = vsel %vm70_vm6, %v1065_v52, %v1035_v25  ;;  %v280_v55 = vmul.f32 %v274_v4, %v885_v63  ;;  %v534_v52 = vld [vmem:[#allocation2 + $0x40] sm:$0xff]  ;;  %v543_v23 = vld [vmem:[#allocation2 + $0x88] sm:$0xff] }
 0x1ef   :  { %408 = vmatmul.f32.vlgmr.msra.gmra.mxu0 %v386_v40  ;;  %v278_v58 = vmul.f32 %v273_v46, %v885_v63  ;;  %v262_v25 = vmul.f32 %v257_v31, %v899_v14  ;;  %563 = vmatpush.msrb.mxu1 %v540_v37  ;;  %v537_v63 = vld [vmem:[#allocation2 + $0x58] sm:$0xff] }
 0x1f0   :  { %439 = vmatpush.msrb.mxu3 %v913_v29  ;;  %466 = vmatpush.msrb.mxu0 %v376_v53  ;;  %v296_v29 = vmul.f32 %v290_v13, %v865_v49  ;;  %v264_v49 = vmul.f32 %v258_v56, %v899_v14  ;;  %v532_v14 = vld [vmem:[#allocation2 + $0x30] sm:$0xff] }
 0x1f1   :  { %564 = vmatpush.msrb.mxu1 %v539_v42 }
 0x1f2   :  { %440 = vmatpush.msrb.mxu3 %v312_v5  ;;  %467 = vmatpush.msrb.mxu0 %v374_v2  ;;  %v542_v5 = vld [vmem:[#allocation2 + $0x80] sm:$0xff] }
 0x1f3   :  { %565 = vmatpush.msrb.mxu1 %v538_v33 }
 0x1f4   :  { %441 = vmatpush.msrb.mxu3 %v310_v38 }
 0x1f5   :  { %566 = vmatpush.msrb.mxu1 %v537_v63 }
 0x1f6   :  { %442 = vmatpush.msrb.mxu3 %v296_v29 }
 0x1f7   :  { %625 = vmatmul.msk.f32.vlgmr.msrb.gmra.mxu0 %vm389_vm9, %v387_v22  ;;  %567 = vmatpush.msrb.mxu1 %v536_v6  ;;  %v555_v22 = vld [vmem:[#allocation2 + $0xe8] sm:$0xff] }
 0x1f8   :  { %443 = vmatpush.msrb.mxu3 %v294_v11  ;;  %584 = vmatpush.msrb.mxu2 %v555_v22 }
 0x1f9   :  { %568 = vmatpush.msrb.mxu1 %v535_v44 }
 0x1fa   :  { %444 = vmatpush.msrb.mxu3 %v280_v55  ;;  %585 = vmatpush.msrb.mxu2 %v554_v48 }
 0x1fb   :  { %569 = vmatpush.msrb.mxu1 %v534_v52 }
 0x1fc   :  { %445 = vmatpush.msrb.mxu3 %v278_v58  ;;  %586 = vmatpush.msrb.mxu2 %v553_v10 }
 0x1fd   :  { %570 = vmatpush.msrb.mxu1 %v533_v41 }
 0x1fe   :  { %446 = vmatpush.msrb.mxu3 %v264_v49  ;;  %587 = vmatpush.msrb.mxu2 %v552_v60 }
 0x1ff   :  { %571 = vmatpush.msrb.mxu1 %v532_v14 }
 0x200   :  { %447 = vmatpush.msrb.mxu3 %v262_v25  ;;  %588 = vmatpush.msrb.mxu2 %v551_v16 }
 0x201   :  { %448 = vmatmul.f32.vlgmr.msrb.gmra.mxu3 %v386_v40  ;;  %572 = vmatpush.msrb.mxu1 %v531_v32 }
 0x202   :  { %589 = vmatpush.msrb.mxu2 %v550_v20 }
 0x203   :  { %573 = vmatpush.msrb.mxu1 %v530_v51 }
 0x204   :  { %590 = vmatpush.msrb.mxu2 %v549_v26 }
 0x205   :  { %574 = vmatpush.msrb.mxu1 %v529_v8  ;;  %v643_v8 = vld [vmem:[%s1183_s7] ss:$0 sm:$0xff] }
 0x206   :  { %591 = vmatpush.msrb.mxu2 %v548_v27 }
 0x207   :  { %575 = vmatpush.msrb.mxu1 %v528_v21 }
 0x208   :  { %592 = vmatpush.msrb.mxu2 %v547_v15 }
 0x209   :  { %576 = vmatpush.msrb.mxu1 %v527_v7 }
 0x20a   :  { %593 = vmatpush.msrb.mxu2 %v546_v28 }
 0x20b   :  { %577 = vmatpush.msrb.mxu1 %v526_v50 }
 0x20c   :  { %594 = vmatpush.msrb.mxu2 %v545_v30 }
 0x20e   :  { %595 = vmatpush.msrb.mxu2 %v544_v18 }
 0x210   :  { %596 = vmatpush.msrb.mxu2 %v543_v23 }
 0x212   :  { %597 = vmatpush.msrb.mxu2 %v542_v5 }
 0x264   :  { %v429_v12 = vpop.f32.mrf.mxu3 }
 0x26c   :  { %v409_v9 = vpop.f32.mrf.mxu0 }
 0x26d   :  { %v410_v19 = vadd.f32 %v409_v9, %v382_v54 }
 0x26f   :  { %v430_v59 = vadd.f32 %v429_v12, %v410_v19 }
 0x271   :  { %v626_v45 = vmul.f32 -1.442695, %v430_v59 }
 0x273   :  { %644 = vpow2.f32 %v626_v45 }
 0x274   :  { %v469_v62 = vpop.f32.mrf.mxu0 }
 0x279   :  { %v645_v47 = vpop.eup %644 }
 0x27a   :  { %v478_v61 = vadd.f32 1.0, %v645_v47 }
 0x27c   :  { %646 = vrcp.f32 %v478_v61  ;;  %v491_v34 = vand.u32 2147483648, %v478_v61  ;;  %v489_v2 = vand.u32 2147483647, %v478_v61  ;;  %vm485_vm11 = vweird.f32 %v478_v61 }
 0x27e   :  { %v492_v29 = vor.u32 1.1754944e-38, %v491_v34  ;;  %vm490_vm13 = vcmp.eq.f32.partialorder %v489_v2, 8.507059e+37 }
 0x282   :  { %v647_v3 = vpop.eup %646 }
 0x283   :  { %v481_v36 = vmul.f32 %v647_v3, %v478_v61  ;;  %vm486_vm10 = vweird.f32 %v647_v3 }
 0x284   :  { %v449_v24 = vpop.f32.mrf.mxu3  ;;  %vm487_vm12 = vmor %vm485_vm11, %vm486_vm10 }
 0x285   :  { %v450_v39 = vadd.f32 %v449_v24, %v382_v54  ;;  %v482_v40 = vsub.f32 1.0, %v481_v36 }
 0x287   :  { %v470_v53 = vadd.f32 %v469_v62, %v450_v39  ;;  %v483_v13 = vmul.f32 %v647_v3, %v482_v40 }
 0x289   :  { %v627_v38 = vmul.f32 -1.442695, %v470_v53  ;;  %v484_v57 = vadd.f32 %v647_v3, %v483_v13 }
 0x28b   :  { %648 = vpow2.f32 %v627_v38  ;;  %v488_v4 = vsel %vm487_vm12, %v647_v3, %v484_v57 }
 0x28c   :  { %v493_v11 = vsel %vm490_vm13, %v492_v29, %v488_v4 }
 0x28d   :  { %v517_v46 = vperm.slane %v493_v11, 0  ;;  %v519_v55 = vperm.slane %v493_v11, 1 }
 0x28f   :  { %v522_v56 = vsel %vm521_vm14, %v517_v46, %v519_v55 }
 0x290   :  { %v524_v31 = vmul.f32 %v522_v56, %v746_v0 }
 0x291   :  { %v649_v58 = vpop.eup %648 }
 0x292   :  { %v479_v49 = vadd.f32 1.0, %v649_v58  ;;  %578 = vmatmul.f32.vlgmr.msrb.gmra.mxu1 %v524_v31 }
 0x294   :  { %650 = vrcp.f32 %v479_v49  ;;  %v506_v42 = vand.u32 2147483648, %v479_v49  ;;  %v504_v63 = vand.u32 2147483647, %v479_v49  ;;  %vm500_vm0 = vweird.f32 %v479_v49 }
 0x296   :  { %v507_v44 = vor.u32 1.1754944e-38, %v506_v42  ;;  %vm505_vm2 = vcmp.eq.f32.partialorder %v504_v63, 8.507059e+37 }
 0x29a   :  { %v651_v25 = vpop.eup %650 }
 0x29b   :  { %v496_v35 = vmul.f32 %v651_v25, %v479_v49  ;;  %vm501_vm15 = vweird.f32 %v651_v25 }
 0x29c   :  { %vm502_vm1 = vmor %vm500_vm0, %vm501_vm15 }
 0x29d   :  { %v497_v37 = vsub.f32 1.0, %v496_v35 }
 0x29f   :  { %v498_v33 = vmul.f32 %v651_v25, %v497_v37 }
 0x2a1   :  { %v499_v6 = vadd.f32 %v651_v25, %v498_v33 }
 0x2a3   :  { %v503_v52 = vsel %vm502_vm1, %v651_v25, %v499_v6 }
 0x2a4   :  { %v508_v41 = vsel %vm505_vm2, %v507_v44, %v503_v52 }
 0x2a5   :  { %v512_v14 = vrot.slane %v508_v41, 6  ;;  %v518_v0 = vperm.slane %v508_v41, 0  ;;  %v520_v32 = vperm.slane %v508_v41, 1 }
 0x2a7   :  { %v514_v51 = vsel %vm513_vm3, %v493_v11, %v512_v14  ;;  %v523_v43 = vsel %vm521_vm14, %v518_v0, %v520_v32 }
 0x2a8   :  { %516 = vst [vmem:[%s1185_s9] sm:$0xf] %v514_v51  ;;  %v525_v54 = vmul.f32 %v523_v43, %v757_v1 }
 0x2aa   :  { %598 = vmatmul.f32.vlgmr.msrb.gmra.mxu2 %v525_v54 }
 0x30f   :  { %v579_v9 = vpop.f32.mrf.mxu1 }
 0x310   :  { %v580_v12 = vadd.f32 %v643_v8, %v579_v9 }
 0x32d   :  { %v599_v17 = vpop.f32.mrf.mxu2 }
 0x32e   :  { %v600_v19 = vadd.f32 %v599_v17, %v580_v12 }
 0x330   :  { %v602_v21 = vmax.f32 %v600_v19, 0.0 }
 0x332   :  { %603 = vst [vmem:[%s1184_s8] sm:$0xff] %v602_v21 }
 0x333   :  { %612 = vsyncpa [#allocation3], 1 }

</bundles_post_ra>
